<compile_context>
chip_gen: v6e
topology: v6e:2x2x1
jax: 0.10.0
libtpu: 0.0.40
codegen_flags: <defaults>
</compile_context>

<pallas_src>
import functools

import jax
import jax.numpy as jnp
from jax.experimental import pallas as pl
from jax.experimental.pallas import tpu as pltpu


_LANES = 128
_ACC_ROWS = 256                       # 32 f32 vregs of independent partial sums
_BLOCK_BYTES = 4 * 1024 * 1024        # ~4 MiB of each input per grid step
_VMEM_LIMIT_BYTES = 48 * 1024 * 1024  # > v5e 16 MiB default, < v7x 64 MiB physical


def _sse_kernel(a_ref, b_ref, o_ref, acc_ref, *,
                rows_valid, blocks_per_split, need_mask):
    """Accumulates sum((a-b)^2) over one split's row stream.

    Emits one lane-dense (_ACC_ROWS, 128) partial per split; the scalar reduce
    and the log10 finalization happen in the wrapper.
    """
    tm = a_ref.shape[0]
    acc_rows = acc_ref.shape[0]
    n_inner = tm // acc_rows
    i = pl.program_id(1)

    @pl.when(i == 0)
    def _():
        acc_ref[...] = jnp.zeros_like(acc_ref)

    if need_mask:
        # Unclamped global block index: identifies rows >= rows_valid that must
        # not contribute (ragged boundary blocks, clamped duplicate blocks).
        base_row = (pl.program_id(0) * blocks_per_split + i) * tm

    def body(j, carry):
        r0 = pl.multiple_of(j * acc_rows, acc_rows)
        d = (a_ref[pl.ds(r0, acc_rows), :].astype(jnp.float32)
             - b_ref[pl.ds(r0, acc_rows), :].astype(jnp.float32))
        d2 = d * d
        if need_mask:
            row_ids = (base_row + r0 +
                       jax.lax.broadcasted_iota(jnp.int32, (acc_rows, _LANES), 0))
            # Select (not arithmetic): also neutralizes NaN/Inf read from the
            # uninitialized VMEM rows of a boundary block.  Keep this invariant
            # if the masking logic is ever refactored.
            d2 = jnp.where(row_ids < rows_valid, d2, 0.0)
        # Chunked accumulation straight into the wide VMEM accumulator bounds
        # the live f32 temporaries to (acc_rows, 128) and keeps 32 independent
        # vreg chains, so the VALU path never becomes the binding slot of this
        # HBM-bound kernel.
        acc_ref[...] += d2
        return carry

    jax.lax.fori_loop(0, n_inner, body, 0,
                      unroll=True if n_inner <= 8 else 4)

    @pl.when(i == pl.num_programs(1) - 1)
    def _():
        # Lane-dense partial: no (1,1) sub-lane store, no in-kernel XLU reduce.
        o_ref[...] = acc_ref[...].reshape(1, acc_rows, _LANES)


def _sse_pallas(a2d, b2d):
    """Sum of squared differences over a (rows, 128) lane-aligned view."""
    rows = a2d.shape[0]
    itemsize = a2d.dtype.itemsize

    # ~_BLOCK_BYTES of each input per grid step (dtype-aware rows), rounded to
    # a multiple of the accumulator height so the inner loop tiles exactly.
    block_rows = max(_BLOCK_BYTES // (_LANES * itemsize), _ACC_ROWS)
    tm = min(block_rows, -(-rows // _ACC_ROWS) * _ACC_ROWS)

    total_blocks = -(-rows // tm)
    # Two-way leading "parallel" axis: shards the row stream across the two
    # TensorCores on v7x megacore; degenerates to a sequential split elsewhere.
    num_splits = 2 if total_blocks >= 2 else 1
    blocks_per_split = -(-total_blocks // num_splits)
    covered_rows = num_splits * blocks_per_split * tm
    need_mask = covered_rows > rows
    last_block = total_blocks - 1

    def in_index_map(c, i):
        gb = c * blocks_per_split + i
        return (jnp.minimum(gb, last_block), 0)   # clamp duplicate tail blocks

    kernel = functools.partial(
        _sse_kernel,
        rows_valid=rows,
        blocks_per_split=blocks_per_split,
        need_mask=need_mask,
    )

    partials = pl.pallas_call(
        kernel,
        out_shape=jax.ShapeDtypeStruct((num_splits, _ACC_ROWS, _LANES),
                                       jnp.float32),
        grid_spec=pltpu.PrefetchScalarGridSpec(
            num_scalar_prefetch=0,
            grid=(num_splits, blocks_per_split),
            in_specs=[
                pl.BlockSpec((tm, _LANES), in_index_map),
                pl.BlockSpec((tm, _LANES), in_index_map),
            ],
            out_specs=pl.BlockSpec((1, _ACC_ROWS, _LANES),
                                   lambda c, i: (c, 0, 0)),
            scratch_shapes=[pltpu.VMEM((_ACC_ROWS, _LANES), jnp.float32)],
        ),
        compiler_params=pltpu.CompilerParams(
            dimension_semantics=("parallel", "arbitrary"),
            vmem_limit_bytes=_VMEM_LIMIT_BYTES,
        ),
    )(a2d, b2d)

    return jnp.sum(partials)


def psnr(a, b, max_val=1.0, *, min_pallas_elems=0):
    """PSNR = 20*log10(max_val) - 10*log10(mean((a - b)**2)).

    min_pallas_elems: inputs smaller than this bypass the Pallas kernel and use
    plain jnp (the pallas_call launch dominates for sub-VMEM inputs).  Left at
    0 here so the demo exercises the kernel; ~1<<18 is a sensible prod value.
    """
    assert a.shape == b.shape, "inputs must have the same shape"
    assert a.dtype == b.dtype, "inputs must have the same dtype"
    n_elems = a.size

    a_flat = jnp.ravel(a)
    b_flat = jnp.ravel(b)

    # Kernel consumes a (rows, 128) view of the lane-aligned prefix; the <128
    # element remainder is folded in with plain jnp (no jnp.pad copies of the
    # full inputs in HBM).
    n_tail = n_elems % _LANES
    n_main = n_elems - n_tail
    if n_main < max(min_pallas_elems, _LANES):
        n_main, n_tail = 0, n_elems

    sse = jnp.zeros((), jnp.float32)
    if n_main:
        a_main = a_flat if n_tail == 0 else a_flat[:n_main]
        b_main = b_flat if n_tail == 0 else b_flat[:n_main]
        rows = n_main // _LANES
        sse = sse + _sse_pallas(a_main.reshape(rows, _LANES),
                                b_main.reshape(rows, _LANES))
    if n_tail:
        a_t = a_flat[n_main:].astype(jnp.float32)
        b_t = b_flat[n_main:].astype(jnp.float32)
        sse = sse + jnp.sum((a_t - b_t) ** 2)

    mse = sse / jnp.float32(n_elems)
    out = 20.0 * jnp.log10(jnp.float32(max_val)) - 10.0 * jnp.log10(mse)
    return out.astype(jnp.float32)


def psnr_ref(a, b, max_val=1.0):
    mse = jnp.mean((a.astype(jnp.float32) - b.astype(jnp.float32)) ** 2)
    return 20.0 * jnp.log10(jnp.float32(max_val)) - 10.0 * jnp.log10(mse)


if __name__ == "__main__":
    key = jax.random.PRNGKey(0)
    ka, kb, kc, kd = jax.random.split(key, 4)

    # Small NCHW-style inputs, as the PyTorch module would typically see.
    a = jax.random.uniform(ka, (2, 4, 16, 16), dtype=jnp.float32)
    b = jax.random.uniform(kb, (2, 4, 16, 16), dtype=jnp.float32)
    out = jax.block_until_ready(psnr(a, b, max_val=1.0))
    ref = jax.block_until_ready(psnr_ref(a, b, max_val=1.0))
    assert jnp.allclose(out, ref, rtol=1e-5, atol=1e-5), (out, ref)

    # Larger, deliberately misaligned shape: exercises the multi-block grid,
    # the 2-way split, the in-kernel boundary mask and the jnp tail path.
    c = jax.random.uniform(kc, (2, 5, 359, 357), dtype=jnp.float32)
    d = jax.random.uniform(kd, (2, 5, 359, 357), dtype=jnp.float32)
    out2 = jax.block_until_ready(psnr(c, d, max_val=1.0))
    ref2 = jax.block_until_ready(psnr_ref(c, d, max_val=1.0))
    assert jnp.allclose(out2, ref2, rtol=1e-4, atol=1e-4), (out2, ref2)

    print("KERNEL_OK")
</pallas_src>

<mosaic_0001>
module attributes {stable_mosaic.version = 11 : i64} {
  func.func @_sse_kernel(%arg0: i32, %arg1: i32, %arg2: memref<256x128xf32, #tpu.memory_space<vmem>>, %arg3: memref<256x128xf32, #tpu.memory_space<vmem>>, %arg4: memref<1x256x128xf32, #tpu.memory_space<vmem>>, %arg5: memref<256x128xf32, #tpu.memory_space<vmem>>) attributes {dimension_semantics = [#tpu.dimension_semantics<parallel>, #tpu.dimension_semantics<arbitrary>], iteration_bounds = array<i64: 1, 1>, scalar_prefetch = 0 : i64, scratch_operands = 1 : i64, tpu.core_type = #tpu.core_type<tc>, window_params = [{transform_indices = @transform_0, window_bounds = array<i64: 256, 128>}, {transform_indices = @transform_1, window_bounds = array<i64: 256, 128>}, {transform_indices = @transform_2, window_bounds = array<i64: 1, 256, 128>}]} {
    %c0_i32 = arith.constant 0 : i32
    %0 = arith.cmpi eq, %arg1, %c0_i32 : i32
    %1 = arith.extui %0 : i1 to i32
    %c0_i32_0 = arith.constant 0 : i32
    %2 = arith.cmpi ne, %1, %c0_i32_0 : i32
    scf.if %2 {
      %cst_11 = arith.constant 0.000000e+00 : f32
      %28 = vector.broadcast %cst_11 : f32 to vector<256x128xf32>
      %c0_12 = arith.constant 0 : index
      %c0_13 = arith.constant 0 : index
      %29 = vector.load %arg5[%c0_12, %c0_13] : memref<256x128xf32, #tpu.memory_space<vmem>>, vector<256x128xf32>
      tpu.vector_store %arg5[%c0_12, %c0_13], %28 {strides = array<i32>} : memref<256x128xf32, #tpu.memory_space<vmem>>, vector<256x128xf32>,
    } else {
    }
    %c1_i32 = arith.constant 1 : i32
    %3 = arith.muli %arg0, %c1_i32 : i32
    %4 = arith.addi %3, %arg1 : i32
    %c256_i32 = arith.constant 256 : i32
    %5 = arith.muli %4, %c256_i32 : i32
    %c0_i32_1 = arith.constant 0 : i32
    %c256_i32_2 = arith.constant 256 : i32
    %6 = arith.muli %c0_i32_1, %c256_i32_2 : i32
    %7 = tpu.assume_multiple %6, 256 : i32
    %8 = arith.index_cast %7 : i32 to index
    %c0 = arith.constant 0 : index
    %9 = vector.load %arg2[%8, %c0] : memref<256x128xf32, #tpu.memory_space<vmem>>, vector<256x128xf32>
    %10 = arith.index_cast %7 : i32 to index
    %c0_3 = arith.constant 0 : index
    %11 = vector.load %arg3[%10, %c0_3] : memref<256x128xf32, #tpu.memory_space<vmem>>, vector<256x128xf32>
    %12 = arith.subf %9, %11 : vector<256x128xf32>
    %13 = arith.mulf %12, %12 : vector<256x128xf32>
    %14 = arith.addi %5, %7 : i32
    %15 = tpu.iota {dimensions = array<i32: 0>} : vector<256x128xi32>
    %16 = vector.broadcast %14 : i32 to vector<256x128xi32>
    %17 = arith.addi %16, %15 : vector<256x128xi32>
    %c16_i32 = arith.constant 16 : i32
    %18 = vector.broadcast %c16_i32 : i32 to vector<256x128xi32>
    %19 = arith.cmpi slt, %17, %18 : vector<256x128xi32>
    %cst = arith.constant 0.000000e+00 : f32
    %20 = vector.broadcast %cst : f32 to vector<256x128xf32>
    %21 = arith.select %19, %13, %20 : vector<256x128xi1>, vector<256x128xf32>
    %c0_4 = arith.constant 0 : index
    %c0_5 = arith.constant 0 : index
    %22 = vector.load %arg5[%c0_4, %c0_5] : memref<256x128xf32, #tpu.memory_space<vmem>>, vector<256x128xf32>
    %23 = arith.addf %22, %21 : vector<256x128xf32>
    %c0_6 = arith.constant 0 : index
    %c0_7 = arith.constant 0 : index
    %24 = vector.load %arg5[%c0_6, %c0_7] : memref<256x128xf32, #tpu.memory_space<vmem>>, vector<256x128xf32>
    tpu.vector_store %arg5[%c0_6, %c0_7], %23 {strides = array<i32>} : memref<256x128xf32, #tpu.memory_space<vmem>>, vector<256x128xf32>,
    %c1_i32_8 = arith.constant 1 : i32
    %c0_i32_9 = arith.constant 0 : i32
    %25 = arith.cmpi eq, %arg1, %c0_i32_9 : i32
    %26 = arith.extui %25 : i1 to i32
    %c0_i32_10 = arith.constant 0 : i32
    %27 = arith.cmpi ne, %26, %c0_i32_10 : i32
    scf.if %27 {
      %c0_11 = arith.constant 0 : index
      %c0_12 = arith.constant 0 : index
      %28 = vector.load %arg5[%c0_11, %c0_12] : memref<256x128xf32, #tpu.memory_space<vmem>>, vector<256x128xf32>
      %29 = vector.shape_cast %28 : vector<256x128xf32> to vector<1x256x128xf32>
      %c0_13 = arith.constant 0 : index
      %c0_14 = arith.constant 0 : index
      %c0_15 = arith.constant 0 : index
      %30 = vector.load %arg4[%c0_13, %c0_14, %c0_15] : memref<1x256x128xf32, #tpu.memory_space<vmem>>, vector<1x256x128xf32>
      tpu.vector_store %arg4[%c0_13, %c0_14, %c0_15], %29 {strides = array<i32>} : memref<1x256x128xf32, #tpu.memory_space<vmem>>, vector<1x256x128xf32>,
    } else {
    }
    return
  }
  func.func @transform_0(%arg0: i32, %arg1: i32) -> (i32, i32) {
    %c1_i32 = arith.constant 1 : i32
    %0 = arith.muli %arg0, %c1_i32 : i32
    %1 = arith.addi %0, %arg1 : i32
    %c0_i32 = arith.constant 0 : i32
    %2 = arith.minsi %1, %c0_i32 : i32
    %c0_i32_0 = arith.constant 0 : i32
    %c0_i32_1 = arith.constant 0 : i32
    return %2, %c0_i32_0 : i32, i32
  }
  func.func @transform_1(%arg0: i32, %arg1: i32) -> (i32, i32) {
    %c1_i32 = arith.constant 1 : i32
    %0 = arith.muli %arg0, %c1_i32 : i32
    %1 = arith.addi %0, %arg1 : i32
    %c0_i32 = arith.constant 0 : i32
    %2 = arith.minsi %1, %c0_i32 : i32
    %c0_i32_0 = arith.constant 0 : i32
    %c0_i32_1 = arith.constant 0 : i32
    return %2, %c0_i32_0 : i32, i32
  }
  func.func @transform_2(%arg0: i32, %arg1: i32) -> (i32, i32, i32) {
    %c0_i32 = arith.constant 0 : i32
    %c0_i32_0 = arith.constant 0 : i32
    %c0_i32_1 = arith.constant 0 : i32
    return %arg0, %c0_i32, %c0_i32_0 : i32, i32, i32
  }
}

</mosaic_0001>

<bundles_post_ra>
// kernel: tpu_custom_call.1
= control target key start
LH: loop header
LB: loop body
LE: loop exit
PB: predicated region body
PF: predicated region fallthrough
CT: control target
= control target key end

     0   :  { %7 = vsyncpa [#allocation4], 0  ;;  %s665_s0 = inlined_call_operand.hbm [shape: f32[16,128], index: 0, kind: input, shape index: {}]   ;;  %s666_s1 = inlined_call_operand.hbm [shape: f32[16,128], index: 1, kind: input, shape index: {}]   ;;  %s667_s2 = inlined_call_operand.hbm [shape: f32[1,256,128], index: 2, kind: output, shape index: {}]  }
   0x1   :  { %8 = vsyncpa [#allocation7], 0 }
   0x2   :  { %9 = vsyncpa [#allocation5], 0 }
   0x3   :  { %20 = vsyncadd [#allocation4], 3840  ;;  %s626_s9 = smov [#allocation3]  }
   0x4   :  { %s25_s10 = sshll.u32 %s626_s9, 4  ;;  %s26_s10 = int_to_ptr.vmem [resolvable:$true] %s25_s10 }
   0x5   :  { %s568_s11 = scalar_lea.vmem %s26_s10, 256  ;;  %s572_s12 = scalar_lea.vmem %s26_s10, 4096 }
   0x6   :  { %p569_p0 = scmp.ne.s32.totalorder %s26_s10, %s568_s11  ;;  %p573_p1 = scmp.lt.s32.totalorder %s26_s10, %s26_s10 }
   0x7   :  { %p574_p2 = scmp.lt.s32.totalorder %s572_s12, %s568_s11 }
   0x9   :  { %p575_p3 = por %p574_p2, %p573_p1 }
   0xb   :  { %p576_p4 = pnand %p575_p3, %p569_p0 }
   0xd   :  { %579 = shalt.err (!%p576_p4)
}
   0xe   :  { %s627_s13 = smov 128   ;;  %s628_s14 = smov 8  }
   0xf   :  { %31 = dma.hbm_to_vmem [thread:$0]  %s665_s0, 256, %s26_s10, [#allocation4], %s627_s13, %s627_s13, %s628_s14  }
  0x10   :  { %42 = vsyncadd [#allocation7], 3840  ;;  %s629_s17 = smov [#allocation6]  }
  0x11   :  { %s47_s18 = sshll.u32 %s629_s17, 4  ;;  %s48_s18 = int_to_ptr.vmem [resolvable:$true] %s47_s18 }
  0x12   :  { %s588_s19 = scalar_lea.vmem %s48_s18, 256  ;;  %s592_s20 = scalar_lea.vmem %s48_s18, 4096 }
  0x13   :  { %p589_p5 = scmp.ne.s32.totalorder %s48_s18, %s588_s19  ;;  %p593_p6 = scmp.lt.s32.totalorder %s48_s18, %s48_s18 }
  0x14   :  { %p594_p7 = scmp.lt.s32.totalorder %s592_s20, %s588_s19 }
  0x16   :  { %p595_p8 = por %p594_p7, %p593_p6 }
  0x18   :  { %p596_p9 = pnand %p595_p8, %p589_p5 }
  0x1a   :  { %599 = shalt.err (!%p596_p9)
}
  0x1b   :  { %53 = dma.hbm_to_vmem [thread:$0]  %s666_s1, 256, %s48_s18, [#allocation7], %s627_s13, %s627_s13, %s628_s14  }
  0x1c   :  { %620 = dma.done.wait [#allocation4], 4096  }
  0x1d   :  { %621 = vsyncadd [#allocation4], 4294963200 }
  0x1e   :  { %622 = dma.done.wait [#allocation7], 4096  }
  0x1f   :  { %623 = vsyncadd [#allocation7], 4294963200  ;;  %v630_v0 = vmov 0.0   ;;  %v110_v1 = vld [vmem:[#allocation3] sm:$0xff]  ;;  %v111_v3 = vld [vmem:[#allocation3 + $0x8] sm:$0xff]  ;;  %s631_s0 = smov [#allocation8]  }
  0x20   :  { %502 = vst [vmem:[#allocation8 + $0x10] sm:$0xff] %v630_v0  ;;  %503 = vst [vmem:[#allocation8 + $0x18] sm:$0xff] %v630_v0  ;;  %v142_v2 = vld [vmem:[#allocation6] sm:$0xff]  ;;  %v143_v5 = vld [vmem:[#allocation6 + $0x8] sm:$0xff]  ;;  %s537_s1 = sshll.u32 %s631_s0, 4  ;;  %s538_s1 = int_to_ptr.vmem [resolvable:$true] %s537_s1 }
  0x21   :  { %504 = vst [vmem:[#allocation8 + $0x20] sm:$0xff] %v630_v0  ;;  %505 = vst [vmem:[#allocation8 + $0x28] sm:$0xff] %v630_v0  ;;  %v174_v4 = vsub.f32 %v110_v1, %v142_v2  ;;  %v175_v6 = vsub.f32 %v111_v3, %v143_v5  ;;  %s600_s23 = scalar_lea.vmem %s538_s1, 4096  ;;  %p605_p11 = scmp.lt.s32.totalorder %s538_s1, %s538_s1 }
  0x22   :  { %506 = vst [vmem:[#allocation8 + $0x30] sm:$0xff] %v630_v0  ;;  %507 = vst [vmem:[#allocation8 + $0x38] sm:$0xff] %v630_v0  ;;  %p601_p10 = scmp.ne.s32.totalorder %s538_s1, %s600_s23  ;;  %p606_p12 = scmp.lt.s32.totalorder %s600_s23, %s600_s23 }
  0x23   :  { %508 = vst [vmem:[#allocation8 + $0x40] sm:$0xff] %v630_v0  ;;  %509 = vst [vmem:[#allocation8 + $0x48] sm:$0xff] %v630_v0  ;;  %v206_v7 = vmul.f32 %v174_v4, %v174_v4  ;;  %v207_v8 = vmul.f32 %v175_v6, %v175_v6 }
  0x24   :  { %510 = vst [vmem:[#allocation8 + $0x50] sm:$0xff] %v630_v0  ;;  %511 = vst [vmem:[#allocation8 + $0x58] sm:$0xff] %v630_v0  ;;  %p607_p13 = por %p606_p12, %p605_p11 }
  0x25   :  { %512 = vst [vmem:[#allocation8 + $0x60] sm:$0xff] %v630_v0  ;;  %513 = vst [vmem:[#allocation8 + $0x68] sm:$0xff] %v630_v0 }
  0x26   :  { %514 = vst [vmem:[#allocation8 + $0x70] sm:$0xff] %v630_v0  ;;  %515 = vst [vmem:[#allocation8 + $0x78] sm:$0xff] %v630_v0  ;;  %p608_p0 = pnand %p607_p13, %p601_p10 }
  0x27   :  { %516 = vst [vmem:[#allocation8 + $0x80] sm:$0xff] %v630_v0  ;;  %517 = vst [vmem:[#allocation8 + $0x88] sm:$0xff] %v630_v0 }
  0x28   :  { %518 = vst [vmem:[#allocation8 + $0x90] sm:$0xff] %v630_v0  ;;  %519 = vst [vmem:[#allocation8 + $0x98] sm:$0xff] %v630_v0 }
  0x29   :  { %520 = vst [vmem:[#allocation8 + $0xa0] sm:$0xff] %v630_v0  ;;  %521 = vst [vmem:[#allocation8 + $0xa8] sm:$0xff] %v630_v0 }
  0x2a   :  { %522 = vst [vmem:[#allocation8 + $0xb0] sm:$0xff] %v630_v0  ;;  %523 = vst [vmem:[#allocation8 + $0xb8] sm:$0xff] %v630_v0 }
  0x2b   :  { %524 = vst [vmem:[#allocation8 + $0xc0] sm:$0xff] %v630_v0  ;;  %525 = vst [vmem:[#allocation8 + $0xc8] sm:$0xff] %v630_v0 }
  0x2c   :  { %526 = vst [vmem:[#allocation8 + $0xd0] sm:$0xff] %v630_v0  ;;  %527 = vst [vmem:[#allocation8 + $0xd8] sm:$0xff] %v630_v0 }
  0x2d   :  { %528 = vst [vmem:[#allocation8 + $0xe0] sm:$0xff] %v630_v0  ;;  %529 = vst [vmem:[#allocation8 + $0xe8] sm:$0xff] %v630_v0 }
  0x2e   :  { %530 = vst [vmem:[#allocation8 + $0xf0] sm:$0xff] %v630_v0  ;;  %531 = vst [vmem:[#allocation8 + $0xf8] sm:$0xff] %v630_v0 }
  0x2f   :  { %500 = vst [vmem:[#allocation8] sm:$0xff] %v206_v7  ;;  %501 = vst [vmem:[#allocation8 + $0x8] sm:$0xff] %v207_v8 }
  0x30   :  { %611 = shalt.err (!%p608_p0)
}
  0x31   :  { %543 = dma.vmem_to_hbm [thread:$0]  %s538_s1, 4096, %s667_s2, [#allocation5], %s627_s13, %s627_s13, %s628_s14  }
  0x32   :  { %624 = dma.done.wait [#allocation5], 4096  }
  0x33   :  { %625 = vsyncadd [#allocation5], 4294963200 }
  0x34   :  { %547 = vsyncpa [#allocation4], 1 }
  0x35   :  { %548 = vsyncpa [#allocation7], 1 }
  0x36   :  { %549 = vsyncpa [#allocation5], 1 }

</bundles_post_ra>
